<compile_context>
chip_gen: v7x
topology: tpu7x:2x2x1
jax: 0.10.0
libtpu: 0.0.40
codegen_flags: <defaults>
</compile_context>

<pallas_src>
import functools

import numpy as np
import jax
import jax.numpy as jnp
from jax import lax
from jax.experimental import pallas as pl
from jax.experimental.pallas import tpu as pltpu


def _round_up(x, m):
    return ((x + m - 1) // m) * m


def _rl_loss_kernel(maxlen_smem, lastti_smem,             # SMEM scalar prefetch (nb,)
                    pred_ref, tgt_ref, lp_ref, len_ref,   # VMEM blocks
                    out_ref,                              # (B_t, 1) f32
                    run_max, run_arg, match_sum, lp_sum,  # VMEM scratch
                    *, v_total, mask_v, gamma):
    bi = pl.program_id(0)
    vi = pl.program_id(1)
    ti = pl.program_id(2)
    nv = pl.num_programs(1)
    nt = pl.num_programs(2)

    B_t, T_t, V_t = pred_ref.shape
    cmp_dtype = run_max.dtype
    log_gamma = float(np.log(gamma))

    # One SMEM scalar read per step (per-batch-tile max length precomputed in
    # the wrapper) decides whether this T tile holds any real tokens.
    active = (ti * T_t) < maxlen_smem[bi]

    # ---- per-batch-tile init at the first grid step of this bi --------------
    @pl.when((vi == 0) & (ti == 0))
    def _():
        match_sum[...] = jnp.zeros_like(match_sum)
        lp_sum[...] = jnp.zeros_like(lp_sum)
        run_max[...] = jnp.full_like(run_max, -jnp.inf)
        run_arg[...] = jnp.zeros_like(run_arg)

    # ---- streaming argmax over the vocab (V) axis ----------------------------
    @pl.when(active)
    def _():
        pred = pred_ref[...]
        if pred.dtype != cmp_dtype:              # static; bf16 stays bf16
            pred = pred.astype(cmp_dtype)
        v_idx = lax.broadcasted_iota(jnp.int32, (1, 1, V_t), 2) + vi * V_t
        if mask_v:                               # static; only if V not V_t-aligned
            pred = jnp.where(v_idx < v_total, pred, jnp.asarray(-jnp.inf, cmp_dtype))
        tile_max = jnp.max(pred, axis=-1)                                  # (B_t,T_t)
        tile_arg = jnp.min(
            jnp.where(pred == tile_max[..., None], v_idx, jnp.int32(2 ** 30)),
            axis=-1)                                                       # (B_t,T_t)
        better = tile_max > run_max[ti]          # strict '>' keeps first-max index
        run_arg[ti] = jnp.where(better, tile_arg, run_arg[ti])
        run_max[ti] = jnp.where(better, tile_max, run_max[ti])

    # ---- at the last V step fold this T tile into the per-row sums ----------
    @pl.when(active & (vi == nv - 1))
    def _():
        lens = len_ref[...]                                                # (B_t,1) i32
        t_idx = lax.broadcasted_iota(jnp.int32, (B_t, T_t), 1) + ti * T_t
        valid = t_idx < lens
        match = jnp.where(valid & (run_arg[ti] == tgt_ref[...]), 1.0, 0.0)
        match_sum[...] += jnp.sum(match, axis=1, keepdims=True)
        lp = jnp.where(valid, lp_ref[...].astype(jnp.float32), 0.0)
        lp_sum[...] += jnp.sum(lp, axis=1, keepdims=True)

    # ---- final per-batch-row loss (unconditional: padded/empty rows write 0) -
    @pl.when((vi == nv - 1) & (ti == nt - 1))
    def _():
        lens_f = len_ref[...].astype(jnp.float32)
        meteor = match_sum[...] / jnp.maximum(lens_f, 1.0)
        # sum_{k=0}^{L-1} gamma^k = (1 - gamma^L) / (1 - gamma); gamma^L via EUP exp
        geo = (1.0 - jnp.exp(lens_f * log_gamma)) / (1.0 - gamma)
        out_ref[...] = -(meteor * geo * lp_sum[...])


def reinforcement_learning_loss(prediction, target_seq, seq_len, action_log_probs,
                                gamma=0.99, *, t_tile=None, v_tile=None):
    B, T, V = prediction.shape
    itemsize = jnp.dtype(prediction.dtype).itemsize
    # bf16 compares stay in bf16 (v6e/v7x bf16 VALU); everything else in f32.
    # TODO(synk): v5e has no bf16 VALU -> an f32 upcast may be preferable there.
    cmp_dtype = jnp.bfloat16 if prediction.dtype == jnp.bfloat16 else jnp.float32

    # ---- batch tiling: avoid copying `prediction` whenever possible ---------
    if B % 8 == 0:
        B_t, B_pad = 8, B
    elif B <= 16:
        B_t, B_pad = B, B                 # block dim == full dim is always legal
    else:
        # TODO(synk): ragged B could also be masked in-kernel to avoid this copy.
        B_t, B_pad = 8, _round_up(B, 8)
    nb = B_pad // B_t

    # ---- T tiling ------------------------------------------------------------
    if t_tile is not None:
        T_t = t_tile
    elif T <= 256:
        T_t = T                           # single T tile
    else:
        T_t = 128                         # fine granularity for the seq-len DMA clamp
    nt = pl.cdiv(T, T_t)

    # ---- V tiling: VMEM-capacity aware (v7x 64 MiB, v5e/v6e 128 MiB) --------
    try:
        vmem_cap = int(pltpu.get_tpu_info().vmem_capacity_bytes)
    except Exception:
        vmem_cap = 64 * 1024 * 1024       # conservative (v7x per-core VMEM)
    tile_budget = min(16 * 1024 * 1024, max(1 * 1024 * 1024, int(vmem_cap * 0.18)))
    if v_tile is not None:
        V_t = v_tile
    elif V <= 128:
        V_t = V
    else:
        v_fit = tile_budget // (B_t * T_t * itemsize)
        V_t = max(128, min((v_fit // 128) * 128, (V // 128) * 128, 4096))
    nv = pl.cdiv(V, V_t)
    mask_v = (nv * V_t) > V               # ragged last V tile -> -inf lane mask
    vmem_limit = int(max(32 * 1024 * 1024,
                         min(vmem_cap * 3 // 4, 100 * 1024 * 1024)))

    # ---- side inputs; pad along B only (prediction untouched when B aligned) -
    pred = prediction
    tgt = target_seq.astype(jnp.int32)
    lp = action_log_probs.astype(jnp.float32)
    lens = seq_len.astype(jnp.int32)
    if B_pad != B:
        pred = jnp.pad(pred, ((0, B_pad - B), (0, 0), (0, 0)))
        tgt = jnp.pad(tgt, ((0, B_pad - B), (0, 0)))
        lp = jnp.pad(lp, ((0, B_pad - B), (0, 0)))
        lens = jnp.pad(lens, (0, B_pad - B))
    lens_2d = lens.reshape(B_pad, 1)

    # Per-batch-tile max length drives both the compute skip and the DMA clamp:
    # trailing T tiles map to the same block index -> Pallas elides the re-DMA.
    maxlen_b = jnp.minimum(jnp.max(lens.reshape(nb, B_t), axis=1), T).astype(jnp.int32)
    lastti_b = jnp.maximum((maxlen_b + T_t - 1) // T_t - 1, 0).astype(jnp.int32)

    def pred_map(bi, vi, ti, maxlen_ref, lastti_ref):
        return (bi, jnp.minimum(ti, lastti_ref[bi]), vi)

    def seq2d_map(bi, vi, ti, maxlen_ref, lastti_ref):
        return (bi, jnp.minimum(ti, lastti_ref[bi]))

    def row_map(bi, vi, ti, maxlen_ref, lastti_ref):
        return (bi, 0)

    grid_spec = pltpu.PrefetchScalarGridSpec(
        num_scalar_prefetch=2,
        grid=(nb, nv, nt),                # T innermost so the clamp elides DMAs
        in_specs=[
            pl.BlockSpec((B_t, T_t, V_t), pred_map),
            pl.BlockSpec((B_t, T_t), seq2d_map),
            pl.BlockSpec((B_t, T_t), seq2d_map),
            pl.BlockSpec((B_t, 1), row_map),
        ],
        out_specs=pl.BlockSpec((B_t, 1), row_map),
        scratch_shapes=[
            pltpu.VMEM((nt, B_t, T_t), cmp_dtype),   # running max over V
            pltpu.VMEM((nt, B_t, T_t), jnp.int32),   # running argmax over V
            pltpu.VMEM((B_t, 1), jnp.float32),       # sum(argmax == target)
            pltpu.VMEM((B_t, 1), jnp.float32),       # sum(log-probs)
        ],
    )

    kernel = functools.partial(_rl_loss_kernel, v_total=V, mask_v=mask_v, gamma=gamma)
    per_row = pl.pallas_call(
        kernel,
        out_shape=jax.ShapeDtypeStruct((B_pad, 1), jnp.float32),
        grid_spec=grid_spec,
        compiler_params=pltpu.CompilerParams(
            dimension_semantics=("parallel", "arbitrary", "arbitrary"),
            vmem_limit_bytes=vmem_limit,
        ),
    )(maxlen_b, lastti_b, pred, tgt, lp, lens_2d)

    return jnp.sum(per_row[:B, 0])


def _reference(prediction, target_seq, seq_len, action_log_probs, gamma=0.99):
    """Numpy replica of the PyTorch forward (with the proxy METEOR reward)."""
    pred = np.asarray(prediction, np.float32)
    tgt = np.asarray(target_seq)
    L = np.asarray(seq_len)
    lp = np.asarray(action_log_probs, np.float32)
    B = pred.shape[0]
    meteor = np.zeros(B, np.float32)
    for b in range(B):
        l = int(L[b])
        if l > 0:
            pt = pred[b, :l].argmax(-1)
            meteor[b] = np.float32((pt == tgt[b, :l]).sum()) / np.float32(max(l, 1))
    cum = np.zeros(B, np.float32)
    for b in range(B):
        c = np.float32(0.0)
        for _ in range(int(L[b])):
            c = np.float32(meteor[b] + np.float32(gamma) * c)
        cum[b] = c
    loss = np.float32(0.0)
    for b in range(B):
        for t in range(int(L[b])):
            loss -= lp[b, t] * cum[b]
    return loss


def _make_inputs(key, B, T, V, lens):
    k1, k2, k3 = jax.random.split(key, 3)
    prediction = jax.random.normal(k1, (B, T, V), jnp.float32)
    target_seq = jax.random.randint(k2, (B, T), 0, V, jnp.int32)
    seq_len = jnp.array(lens, jnp.int32)
    logits = jax.random.normal(k3, (B, T, V), jnp.float32)
    action_log_probs = jnp.take_along_axis(
        jax.nn.log_softmax(logits, axis=-1), target_seq[..., None], axis=-1
    )[..., 0]
    return prediction, target_seq, seq_len, action_log_probs


if __name__ == "__main__":
    key = jax.random.PRNGKey(0)
    k_small, k_big = jax.random.split(key)

    # --- small single-tile smoke test (B_t == B, T_t == T, V_t == V) --------
    pred, tgt, sl, alp = _make_inputs(k_small, B=2, T=8, V=32, lens=[8, 5])
    loss = jax.block_until_ready(reinforcement_learning_loss(pred, tgt, sl, alp))
    ref = _reference(pred, tgt, sl, alp)
    assert np.allclose(float(loss), float(ref), rtol=1e-4, atol=1e-3), (float(loss), float(ref))

    # --- multi-tile test: 2 batch tiles, 4 T tiles (ragged T=390), 2 V tiles
    #     (ragged V=300); first batch tile (max len 120) exercises the
    #     seq-len DMA clamp / compute skip on T tiles 1..3. --------------------
    lens2 = [100, 50, 0, 120, 7, 99, 64, 88,
             390, 250, 128, 129, 300, 1, 200, 390]
    pred2, tgt2, sl2, alp2 = _make_inputs(k_big, B=16, T=390, V=300, lens=lens2)
    loss2 = jax.block_until_ready(reinforcement_learning_loss(pred2, tgt2, sl2, alp2))
    ref2 = _reference(pred2, tgt2, sl2, alp2)
    assert np.allclose(float(loss2), float(ref2), rtol=5e-4, atol=1e-2), (float(loss2), float(ref2))

    print("KERNEL_OK")
</pallas_src>

<mosaic_0001>
module attributes {stable_mosaic.version = 11 : i64} {
  func.func @_rl_loss_kernel(%arg0: i32, %arg1: i32, %arg2: i32, %arg3: memref<1xi32, #tpu.memory_space<smem>>, %arg4: memref<1xi32, #tpu.memory_space<smem>>, %arg5: memref<2x8x32xf32, #tpu.memory_space<vmem>>, %arg6: memref<2x8xi32, #tpu.memory_space<vmem>>, %arg7: memref<2x8xf32, #tpu.memory_space<vmem>>, %arg8: memref<2x1xi32, #tpu.memory_space<vmem>>, %arg9: memref<2x1xf32, #tpu.memory_space<vmem>>, %arg10: memref<1x2x8xf32, #tpu.memory_space<vmem>>, %arg11: memref<1x2x8xi32, #tpu.memory_space<vmem>>, %arg12: memref<2x1xf32, #tpu.memory_space<vmem>>, %arg13: memref<2x1xf32, #tpu.memory_space<vmem>>) attributes {dimension_semantics = [#tpu.dimension_semantics<parallel>, #tpu.dimension_semantics<arbitrary>, #tpu.dimension_semantics<arbitrary>], iteration_bounds = array<i64: 1, 1, 1>, scalar_prefetch = 2 : i64, scratch_operands = 4 : i64, tpu.core_type = #tpu.core_type<tc>, window_params = [{transform_indices = @transform_0, window_bounds = array<i64: 2, 8, 32>}, {transform_indices = @transform_1, window_bounds = array<i64: 2, 8>}, {transform_indices = @transform_2, window_bounds = array<i64: 2, 8>}, {transform_indices = @transform_3, window_bounds = array<i64: 2, 1>}, {transform_indices = @transform_4, window_bounds = array<i64: 2, 1>}]} {
    %c8_i32 = arith.constant 8 : i32
    %0 = arith.muli %arg2, %c8_i32 : i32
    %1 = arith.index_cast %arg0 : i32 to index
    %2 = memref.load %arg3[%1] : memref<1xi32, #tpu.memory_space<smem>>
    %3 = arith.cmpi slt, %0, %2 : i32
    %c0_i32 = arith.constant 0 : i32
    %4 = arith.cmpi eq, %arg1, %c0_i32 : i32
    %c0_i32_0 = arith.constant 0 : i32
    %5 = arith.cmpi eq, %arg2, %c0_i32_0 : i32
    %6 = arith.andi %4, %5 : i1
    %7 = arith.extui %6 : i1 to i32
    %c0_i32_1 = arith.constant 0 : i32
    %8 = arith.cmpi ne, %7, %c0_i32_1 : i32
    scf.if %8 {
      %cst = arith.constant 0.000000e+00 : f32
      %20 = vector.broadcast %cst : f32 to vector<2x1xf32>
      %c0 = arith.constant 0 : index
      %c0_8 = arith.constant 0 : index
      %21 = vector.load %arg12[%c0, %c0_8] : memref<2x1xf32, #tpu.memory_space<vmem>>, vector<2x1xf32>
      tpu.vector_store %arg12[%c0, %c0_8], %20 {strides = array<i32>} : memref<2x1xf32, #tpu.memory_space<vmem>>, vector<2x1xf32>,
      %cst_9 = arith.constant 0.000000e+00 : f32
      %22 = vector.broadcast %cst_9 : f32 to vector<2x1xf32>
      %c0_10 = arith.constant 0 : index
      %c0_11 = arith.constant 0 : index
      %23 = vector.load %arg13[%c0_10, %c0_11] : memref<2x1xf32, #tpu.memory_space<vmem>>, vector<2x1xf32>
      tpu.vector_store %arg13[%c0_10, %c0_11], %22 {strides = array<i32>} : memref<2x1xf32, #tpu.memory_space<vmem>>, vector<2x1xf32>,
      %cst_12 = arith.constant 0xFF800000 : f32
      %24 = vector.broadcast %cst_12 : f32 to vector<1x2x8xf32>
      %c0_13 = arith.constant 0 : index
      %c0_14 = arith.constant 0 : index
      %c0_15 = arith.constant 0 : index
      %25 = vector.load %arg10[%c0_13, %c0_14, %c0_15] : memref<1x2x8xf32, #tpu.memory_space<vmem>>, vector<1x2x8xf32>
      tpu.vector_store %arg10[%c0_13, %c0_14, %c0_15], %24 {strides = array<i32>} : memref<1x2x8xf32, #tpu.memory_space<vmem>>, vector<1x2x8xf32>,
      %c0_i32_16 = arith.constant 0 : i32
      %26 = vector.broadcast %c0_i32_16 : i32 to vector<1x2x8xi32>
      %c0_17 = arith.constant 0 : index
      %c0_18 = arith.constant 0 : index
      %c0_19 = arith.constant 0 : index
      %27 = vector.load %arg11[%c0_17, %c0_18, %c0_19] : memref<1x2x8xi32, #tpu.memory_space<vmem>>, vector<1x2x8xi32>
      tpu.vector_store %arg11[%c0_17, %c0_18, %c0_19], %26 {strides = array<i32>} : memref<1x2x8xi32, #tpu.memory_space<vmem>>, vector<1x2x8xi32>,
    } else {
    }
    %9 = arith.extui %3 : i1 to i32
    %c0_i32_2 = arith.constant 0 : i32
    %10 = arith.cmpi ne, %9, %c0_i32_2 : i32
    scf.if %10 {
      %c0 = arith.constant 0 : index
      %c0_8 = arith.constant 0 : index
      %c0_9 = arith.constant 0 : index
      %20 = vector.load %arg5[%c0, %c0_8, %c0_9] : memref<2x8x32xf32, #tpu.memory_space<vmem>>, vector<2x8x32xf32>
      %21 = tpu.iota {dimensions = array<i32: 2>} : vector<1x1x32xi32>
      %c32_i32 = arith.constant 32 : i32
      %22 = arith.muli %arg1, %c32_i32 : i32
      %23 = vector.broadcast %22 : i32 to vector<1x1x32xi32>
      %24 = arith.addi %21, %23 : vector<1x1x32xi32>
      %cst = arith.constant dense<0xFF800000> : vector<2x8xf32>
      %25 = vector.multi_reduction <maximumf>, %20, %cst [2] : vector<2x8x32xf32> to vector<2x8xf32>
      %26 = vector.shape_cast %25 : vector<2x8xf32> to vector<2x8x1xf32>
      %27 = vector.broadcast %26 : vector<2x8x1xf32> to vector<2x8x32xf32>
      %28 = arith.cmpf oeq, %20, %27 : vector<2x8x32xf32>
      %c1073741824_i32 = arith.constant 1073741824 : i32
      %29 = vector.shape_cast %24 : vector<1x1x32xi32> to vector<1x1x32xi32>
      %30 = vector.broadcast %29 : vector<1x1x32xi32> to vector<2x8x32xi32>
      %31 = vector.broadcast %c1073741824_i32 : i32 to vector<2x8x32xi32>
      %32 = arith.select %28, %30, %31 : vector<2x8x32xi1>, vector<2x8x32xi32>
      %cst_10 = arith.constant dense<2147483647> : vector<2x8xi32>
      %33 = vector.multi_reduction <minsi>, %32, %cst_10 [2] : vector<2x8x32xi32> to vector<2x8xi32>
      %34 = arith.index_cast %arg2 : i32 to index
      %c0_11 = arith.constant 0 : index
      %c0_12 = arith.constant 0 : index
      %35 = vector.load %arg10[%34, %c0_11, %c0_12] : memref<1x2x8xf32, #tpu.memory_space<vmem>>, vector<1x2x8xf32>
      %36 = vector.shape_cast %35 : vector<1x2x8xf32> to vector<2x8xf32>
      %37 = arith.cmpf ogt, %25, %36 : vector<2x8xf32>
      %38 = arith.index_cast %arg2 : i32 to index
      %c0_13 = arith.constant 0 : index
      %c0_14 = arith.constant 0 : index
      %39 = vector.load %arg11[%38, %c0_13, %c0_14] : memref<1x2x8xi32, #tpu.memory_space<vmem>>, vector<1x2x8xi32>
      %40 = vector.shape_cast %39 : vector<1x2x8xi32> to vector<2x8xi32>
      %41 = arith.select %37, %33, %40 : vector<2x8xi1>, vector<2x8xi32>
      %42 = arith.index_cast %arg2 : i32 to index
      %c0_15 = arith.constant 0 : index
      %c0_16 = arith.constant 0 : index
      %43 = vector.load %arg11[%42, %c0_15, %c0_16] : memref<1x2x8xi32, #tpu.memory_space<vmem>>, vector<1x2x8xi32>
      %44 = vector.shape_cast %43 : vector<1x2x8xi32> to vector<2x8xi32>
      %45 = vector.shape_cast %41 : vector<2x8xi32> to vector<1x2x8xi32>
      tpu.vector_store %arg11[%42, %c0_15, %c0_16], %45 {strides = array<i32>} : memref<1x2x8xi32, #tpu.memory_space<vmem>>, vector<1x2x8xi32>,
      %46 = arith.index_cast %arg2 : i32 to index
      %c0_17 = arith.constant 0 : index
      %c0_18 = arith.constant 0 : index
      %47 = vector.load %arg10[%46, %c0_17, %c0_18] : memref<1x2x8xf32, #tpu.memory_space<vmem>>, vector<1x2x8xf32>
      %48 = vector.shape_cast %47 : vector<1x2x8xf32> to vector<2x8xf32>
      %49 = arith.select %37, %25, %48 : vector<2x8xi1>, vector<2x8xf32>
      %50 = arith.index_cast %arg2 : i32 to index
      %c0_19 = arith.constant 0 : index
      %c0_20 = arith.constant 0 : index
      %51 = vector.load %arg10[%50, %c0_19, %c0_20] : memref<1x2x8xf32, #tpu.memory_space<vmem>>, vector<1x2x8xf32>
      %52 = vector.shape_cast %51 : vector<1x2x8xf32> to vector<2x8xf32>
      %53 = vector.shape_cast %49 : vector<2x8xf32> to vector<1x2x8xf32>
      tpu.vector_store %arg10[%50, %c0_19, %c0_20], %53 {strides = array<i32>} : memref<1x2x8xf32, #tpu.memory_space<vmem>>, vector<1x2x8xf32>,
    } else {
    }
    %c0_i32_3 = arith.constant 0 : i32
    %11 = arith.cmpi eq, %arg1, %c0_i32_3 : i32
    %12 = arith.andi %3, %11 : i1
    %13 = arith.extui %12 : i1 to i32
    %c0_i32_4 = arith.constant 0 : i32
    %14 = arith.cmpi ne, %13, %c0_i32_4 : i32
    scf.if %14 {
      %c0 = arith.constant 0 : index
      %c0_8 = arith.constant 0 : index
      %20 = vector.load %arg8[%c0, %c0_8] : memref<2x1xi32, #tpu.memory_space<vmem>>, vector<2x1xi32>
      %21 = tpu.iota {dimensions = array<i32: 1>} : vector<2x8xi32>
      %c8_i32_9 = arith.constant 8 : i32
      %22 = arith.muli %arg2, %c8_i32_9 : i32
      %23 = vector.broadcast %22 : i32 to vector<2x8xi32>
      %24 = arith.addi %21, %23 : vector<2x8xi32>
      %25 = vector.broadcast %20 : vector<2x1xi32> to vector<2x8xi32>
      %26 = arith.cmpi slt, %24, %25 : vector<2x8xi32>
      %27 = arith.index_cast %arg2 : i32 to index
      %c0_10 = arith.constant 0 : index
      %c0_11 = arith.constant 0 : index
      %28 = vector.load %arg11[%27, %c0_10, %c0_11] : memref<1x2x8xi32, #tpu.memory_space<vmem>>, vector<1x2x8xi32>
      %29 = vector.shape_cast %28 : vector<1x2x8xi32> to vector<2x8xi32>
      %c0_12 = arith.constant 0 : index
      %c0_13 = arith.constant 0 : index
      %30 = vector.load %arg6[%c0_12, %c0_13] : memref<2x8xi32, #tpu.memory_space<vmem>>, vector<2x8xi32>
      %31 = arith.cmpi eq, %29, %30 : vector<2x8xi32>
      %32 = arith.andi %26, %31 : vector<2x8xi1>
      %cst = arith.constant 1.000000e+00 : f32
      %cst_14 = arith.constant 0.000000e+00 : f32
      %33 = vector.broadcast %cst : f32 to vector<2x8xf32>
      %34 = vector.broadcast %cst_14 : f32 to vector<2x8xf32>
      %35 = arith.select %32, %33, %34 : vector<2x8xi1>, vector<2x8xf32>
      %c0_15 = arith.constant 0 : index
      %c0_16 = arith.constant 0 : index
      %36 = vector.load %arg12[%c0_15, %c0_16] : memref<2x1xf32, #tpu.memory_space<vmem>>, vector<2x1xf32>
      %cst_17 = arith.constant dense<0.000000e+00> : vector<2xf32>
      %37 = vector.multi_reduction <add>, %35, %cst_17 [1] : vector<2x8xf32> to vector<2xf32>
      %38 = vector.shape_cast %37 : vector<2xf32> to vector<2x1xf32>
      %39 = arith.addf %36, %38 : vector<2x1xf32>
      %c0_18 = arith.constant 0 : index
      %c0_19 = arith.constant 0 : index
      %40 = vector.load %arg12[%c0_18, %c0_19] : memref<2x1xf32, #tpu.memory_space<vmem>>, vector<2x1xf32>
      tpu.vector_store %arg12[%c0_18, %c0_19], %39 {strides = array<i32>} : memref<2x1xf32, #tpu.memory_space<vmem>>, vector<2x1xf32>,
      %c0_20 = arith.constant 0 : index
      %c0_21 = arith.constant 0 : index
      %41 = vector.load %arg7[%c0_20, %c0_21] : memref<2x8xf32, #tpu.memory_space<vmem>>, vector<2x8xf32>
      %cst_22 = arith.constant 0.000000e+00 : f32
      %42 = vector.broadcast %cst_22 : f32 to vector<2x8xf32>
      %43 = arith.select %26, %41, %42 : vector<2x8xi1>, vector<2x8xf32>
      %c0_23 = arith.constant 0 : index
      %c0_24 = arith.constant 0 : index
      %44 = vector.load %arg13[%c0_23, %c0_24] : memref<2x1xf32, #tpu.memory_space<vmem>>, vector<2x1xf32>
      %cst_25 = arith.constant dense<0.000000e+00> : vector<2xf32>
      %45 = vector.multi_reduction <add>, %43, %cst_25 [1] : vector<2x8xf32> to vector<2xf32>
      %46 = vector.shape_cast %45 : vector<2xf32> to vector<2x1xf32>
      %47 = arith.addf %44, %46 : vector<2x1xf32>
      %c0_26 = arith.constant 0 : index
      %c0_27 = arith.constant 0 : index
      %48 = vector.load %arg13[%c0_26, %c0_27] : memref<2x1xf32, #tpu.memory_space<vmem>>, vector<2x1xf32>
      tpu.vector_store %arg13[%c0_26, %c0_27], %47 {strides = array<i32>} : memref<2x1xf32, #tpu.memory_space<vmem>>, vector<2x1xf32>,
    } else {
    }
    %c0_i32_5 = arith.constant 0 : i32
    %15 = arith.cmpi eq, %arg1, %c0_i32_5 : i32
    %c0_i32_6 = arith.constant 0 : i32
    %16 = arith.cmpi eq, %arg2, %c0_i32_6 : i32
    %17 = arith.andi %15, %16 : i1
    %18 = arith.extui %17 : i1 to i32
    %c0_i32_7 = arith.constant 0 : i32
    %19 = arith.cmpi ne, %18, %c0_i32_7 : i32
    scf.if %19 {
      %c0 = arith.constant 0 : index
      %c0_8 = arith.constant 0 : index
      %20 = vector.load %arg8[%c0, %c0_8] : memref<2x1xi32, #tpu.memory_space<vmem>>, vector<2x1xi32>
      %21 = arith.sitofp %20 : vector<2x1xi32> to vector<2x1xf32>
      %c0_9 = arith.constant 0 : index
      %c0_10 = arith.constant 0 : index
      %22 = vector.load %arg12[%c0_9, %c0_10] : memref<2x1xf32, #tpu.memory_space<vmem>>, vector<2x1xf32>
      %cst = arith.constant 1.000000e+00 : f32
      %23 = vector.broadcast %cst : f32 to vector<2x1xf32>
      %24 = arith.maximumf %21, %23 : vector<2x1xf32>
      %25 = arith.divf %22, %24 : vector<2x1xf32>
      %cst_11 = arith.constant -0.0100503359 : f32
      %26 = vector.broadcast %cst_11 : f32 to vector<2x1xf32>
      %27 = arith.mulf %21, %26 : vector<2x1xf32>
      %28 = math.exp %27 : vector<2x1xf32>
      %cst_12 = arith.constant 1.000000e+00 : f32
      %29 = vector.broadcast %cst_12 : f32 to vector<2x1xf32>
      %30 = arith.subf %29, %28 : vector<2x1xf32>
      %cst_13 = arith.constant 0.00999999977 : f32
      %31 = vector.broadcast %cst_13 : f32 to vector<2x1xf32>
      %32 = arith.divf %30, %31 : vector<2x1xf32>
      %33 = arith.mulf %25, %32 : vector<2x1xf32>
      %c0_14 = arith.constant 0 : index
      %c0_15 = arith.constant 0 : index
      %34 = vector.load %arg13[%c0_14, %c0_15] : memref<2x1xf32, #tpu.memory_space<vmem>>, vector<2x1xf32>
      %35 = arith.mulf %33, %34 : vector<2x1xf32>
      %cst_16 = arith.constant 0.000000e+00 : f32
      %36 = vector.broadcast %cst_16 : f32 to vector<2x1xf32>
      %37 = arith.subf %36, %35 : vector<2x1xf32>
      %c0_17 = arith.constant 0 : index
      %c0_18 = arith.constant 0 : index
      %38 = vector.load %arg9[%c0_17, %c0_18] : memref<2x1xf32, #tpu.memory_space<vmem>>, vector<2x1xf32>
      tpu.vector_store %arg9[%c0_17, %c0_18], %37 {strides = array<i32>} : memref<2x1xf32, #tpu.memory_space<vmem>>, vector<2x1xf32>,
    } else {
    }
    return
  }
  func.func @transform_0(%arg0: i32, %arg1: i32, %arg2: i32, %arg3: memref<1xi32, #tpu.memory_space<smem>>, %arg4: memref<1xi32, #tpu.memory_space<smem>>) -> (i32, i32, i32) {
    %0 = arith.index_cast %arg0 : i32 to index
    %1 = memref.load %arg4[%0] : memref<1xi32, #tpu.memory_space<smem>>
    %2 = arith.minsi %arg2, %1 : i32
    %c0_i32 = arith.constant 0 : i32
    return %arg0, %2, %arg1 : i32, i32, i32
  }
  func.func @transform_1(%arg0: i32, %arg1: i32, %arg2: i32, %arg3: memref<1xi32, #tpu.memory_space<smem>>, %arg4: memref<1xi32, #tpu.memory_space<smem>>) -> (i32, i32) {
    %0 = arith.index_cast %arg0 : i32 to index
    %1 = memref.load %arg4[%0] : memref<1xi32, #tpu.memory_space<smem>>
    %2 = arith.minsi %arg2, %1 : i32
    %c0_i32 = arith.constant 0 : i32
    return %arg0, %2 : i32, i32
  }
  func.func @transform_2(%arg0: i32, %arg1: i32, %arg2: i32, %arg3: memref<1xi32, #tpu.memory_space<smem>>, %arg4: memref<1xi32, #tpu.memory_space<smem>>) -> (i32, i32) {
    %0 = arith.index_cast %arg0 : i32 to index
    %1 = memref.load %arg4[%0] : memref<1xi32, #tpu.memory_space<smem>>
    %2 = arith.minsi %arg2, %1 : i32
    %c0_i32 = arith.constant 0 : i32
    return %arg0, %2 : i32, i32
  }
  func.func @transform_3(%arg0: i32, %arg1: i32, %arg2: i32, %arg3: memref<1xi32, #tpu.memory_space<smem>>, %arg4: memref<1xi32, #tpu.memory_space<smem>>) -> (i32, i32) {
    %c0_i32 = arith.constant 0 : i32
    %c0_i32_0 = arith.constant 0 : i32
    return %arg0, %c0_i32 : i32, i32
  }
  func.func @transform_4(%arg0: i32, %arg1: i32, %arg2: i32, %arg3: memref<1xi32, #tpu.memory_space<smem>>, %arg4: memref<1xi32, #tpu.memory_space<smem>>) -> (i32, i32) {
    %c0_i32 = arith.constant 0 : i32
    %c0_i32_0 = arith.constant 0 : i32
    return %arg0, %c0_i32 : i32, i32
  }
}

</mosaic_0001>

<bundles_post_ra>
// kernel: tpu_custom_call.1
= control target key start
LH: loop header
LB: loop body
LE: loop exit
PB: predicated region body
PF: predicated region fallthrough
CT: control target
= control target key end

     0   :  { %13 = vsyncpa [#allocation10], 0  ;;  %s393_s23 = smov [#allocation9]   ;;  %s520_s0 = inlined_call_operand.<no memory space> [shape: s32[1], index: 0, kind: input, shape index: {}]   ;;  %s521_s1 = inlined_call_operand.<no memory space> [shape: s32[1], index: 1, kind: input, shape index: {}]   ;;  %s522_s2 = inlined_call_operand.hbm [shape: f32[2,8,32], index: 2, kind: input, shape index: {}]   ;;  %s523_s3 = inlined_call_operand.vmem [shape: s32[2,8], index: 3, kind: input, shape index: {}]   ;;  %s524_s4 = inlined_call_operand.vmem [shape: f32[2,8], index: 4, kind: input, shape index: {}]   ;;  %s525_s5 = inlined_call_operand.vmem [shape: s32[2,1], index: 5, kind: input, shape index: {}]   ;;  %s526_s6 = inlined_call_operand.vmem [shape: f32[2,1], index: 6, kind: output, shape index: {}]  }
   0x1   :  { %p335_p0 = scmp.gt.s32.totalorder %s521_s1, 0  ;;  %s24_s24 = sshll.u32 %s393_s23, 4  ;;  %s25_s24 = int_to_ptr.vmem [resolvable:$true] %s24_s24 }
   0x2   :  { %s369_s11 = scalar_lea.hbm %s522_s2, 256 }
   0x3   :  { %s443_s27 = scalar_select %p335_p0, 0, %s521_s1 }
   0x5   :  { %s336_s28 = sshll.u32 %s443_s27, 7 }
   0x6   :  { %s23_s7 = scalar_lea.hbm %s522_s2, %s336_s28 }
   0x7   :  { %s367_s8 = scalar_lea.hbm %s23_s7, 256  ;;  %p370_p2 = scmp.lt.u32.totalorder %s23_s7, %s522_s2 }
   0x8   :  { %p368_p1 = scmp.ne.s32.totalorder %s23_s7, %s367_s8  ;;  %p371_p3 = scmp.lt.u32.totalorder %s369_s11, %s367_s8 }
   0x9   :  { %p373_p5 = scmp.lt.u32.totalorder %s367_s8, %s23_s7 }
   0xa   :  { %p372_p4 = por %p371_p3, %p370_p2 }
   0xc   :  { %p374_p6 = por %p373_p5, %p372_p4 }
   0xe   :  { %p375_p7 = pnand %p374_p6, %p368_p1 }
  0x10   :  { %378 = shalt.err (!%p375_p7)
}
  0x11   :  { %s379_s14 = scalar_lea.vmem %s25_s24, 256  ;;  %p384_p9 = scmp.lt.s32.totalorder %s25_s24, %s25_s24 }
  0x12   :  { %p380_p8 = scmp.ne.s32.totalorder %s25_s24, %s379_s14  ;;  %p385_p10 = scmp.lt.s32.totalorder %s379_s14, %s379_s14 }
  0x14   :  { %p386_p11 = por %p385_p10, %p384_p9 }
  0x16   :  { %p387_p12 = pnand %p386_p11, %p380_p8 }
  0x18   :  { %390 = shalt.err (!%p387_p12)
}
  0x19   :  { %s394_s15 = smov 128   ;;  %s395_s16 = smov 8  }
  0x1a   :  { %30 = dma.hbm_to_vmem [thread:$0]  %s23_s7, 256, %s25_s24, [#allocation10], %s394_s15, %s394_s15, %s395_s16  }
  0x1b   :  { %391 = dma.done.wait [#allocation10], 256  }
  0x1c   :  { %392 = vsyncadd [#allocation10], 4294967040  ;;  %p339_p13 = scmp.lt.s32.totalorder %s521_s1, 0  ;;  %p347_p0 = scmp.gt.s32.totalorder %s520_s0, 0  ;;  %vm106_vm0 = vcmask 1024   ;;  %v396_v0 = vmov 0.0  }
  0x1d   :  { %107 = vst.msk [vmem:[#allocation4] sm:$0x3] %vm106_vm0, %v396_v0  ;;  %108 = vst.msk [vmem:[#allocation5] sm:$0x3] %vm106_vm0, %v396_v0  ;;  %vm109_vm1 = vcmask 58368   ;;  %v397_v1 = vmov -inf  }
  0x1e   :  { %s528_s27 = smov (!%p339_p13, %s443_s27), 0  ;;  %110 = vst.msk [vmem:[#allocation2] sm:$0x3] %vm109_vm1, %v397_v1  ;;  %v398_v2 = vmov 0   ;;  %p348_p1 = scmp.le.s32.totalorder %s520_s0, 0 }
  0x1f   :  { %111 = vst.msk [vmem:[#allocation3] sm:$0x3] %vm109_vm1, %v398_v2  ;;  %s341_s20 = sshll.u32 %s528_s27, 1  ;;  %v115_v3 = vld [vmem:[#allocation9] sm:$0xff] (!%p348_p1)  ;;  %vm122_vm2 = vcmask (!%p348_p1), 261120   ;;  %v116_v4 = vld [vmem:[#allocation9 + $0x8] sm:$0xff] (!%p348_p1)  ;;  %v117_v5 = vlaneseq (!%p348_p1) }
  0x20   :  { %s469_s22 = scalar_lea.vmem %s523_s3, %s341_s20  ;;  %s474_s25 = scalar_lea.vmem %s524_s4, %s341_s20  ;;  %v123_v6 = vsel (!%p348_p1), %vm122_vm2, %v115_v3, -inf  ;;  %v126_v8 = vsel (!%p348_p1), %vm122_vm2, %v116_v4, -inf  ;;  %v399_v40 = vmov (!%p348_p1), 0   ;;  %vm217_vm9 = vcmask (!%p348_p1), 1041409  }
  0x21   :  { %114 = sbr.rel (%p348_p1) target bundleno = 613 (0x265), region = 29  ;;  %124 = vmax.xlane.f32.xlu0 (!%p348_p1), %v123_v6  ;;  %v480_v7 = vshrl.u32 (!%p348_p1), %v117_v5, 7  ;;  %v485_v14 = vand.u32 (!%p348_p1), 127, %v117_v5  ;;  %361 = vset.pattern.permute.xlu1 (!%p348_p1), %v399_v40 }
  0x22   :  { %360 = vset.pattern.permute.xlu0 (!%p348_p1), %v399_v40 }
  0x23   :  { %v176_v10 = vsub.s32 (!%p348_p1), 1, %v480_v7  ;;  %v169_v12 = vsub.s32 (!%p348_p1), 0, %v480_v7  ;;  %v211_v61 = vsub.s32 (!%p348_p1), %v485_v14, %v480_v7 }
  0x25   :  { %v165_v9 = vld [vmem:[#allocation2] sm:$0x3] (!%p348_p1)  ;;  %127 = vmax.xlane.f32.xlu0 (!%p348_p1), %v126_v8 }
  0x26   :  { %v177_v11 = vrot.slane (!%p348_p1), %v165_v9, %v176_v10  ;;  %v170_v13 = vrot.slane (!%p348_p1), %v165_v9, %v169_v12  ;;  %v186_v25 = vld [vmem:[#allocation3] sm:$0x3] (!%p348_p1)  ;;  %v221_v37 = vld [vmem:[#allocation2] sm:$0x3] (!%p348_p1) }
  0x27   :  { %v190_v26 = vrot.slane (!%p348_p1), %v186_v25, %v169_v12  ;;  %v197_v27 = vrot.slane (!%p348_p1), %v186_v25, %v176_v10  ;;  %v233_v38 = vrot.slane (!%p348_p1), %v221_v37, %v176_v10  ;;  %v226_v39 = vrot.slane (!%p348_p1), %v221_v37, %v169_v12 }
  0x28   :  { %179 = vbcast.lane.b32.xlu1 %v177_v11, 256 }
  0x3b   :  { %172 = vbcast.lane.b32.xlu0 %v170_v13, 256 }
  0x9a   :  { %v180_v28 = vpop.permute.xlu1 %179 }
  0xae   :  { %v487_v15 = vpop.xlane.xlu0 %124 }
  0xaf   :  { %vm129_vm3 = vcmp.eq.f32.partialorder %v115_v3, %v487_v15 }
  0xb0   :  { %v131_v16 = vsel %vm129_vm3, %v485_v14, 1073741824 }
  0xb1   :  { %v133_v17 = vsel %vm122_vm2, %v131_v16, 2147483647 }
  0xb2   :  { %v128_v18 = vpop.xlane.xlu0 %127  ;;  %v135_v19 = vshra.s32 %v133_v17, 16  ;;  %v134_v29 = vand.u32 65535, %v133_v17 }
  0xb3   :  { %vm130_vm4 = vcmp.eq.f32.partialorder %v116_v4, %v128_v18  ;;  %vm184_vm8 = vcmp.gt.f32.partialorder %v128_v18, %v180_v28 }
  0xb4   :  { %v137_v20 = vcvt.s32.f32 %v135_v19  ;;  %v132_v21 = vsel %vm130_vm4, %v485_v14, 1073741824  ;;  %v136_v31 = vcvt.s32.f32 %v134_v29 }
  0xb5   :  { %v148_v22 = vsel %vm122_vm2, %v132_v21, 2147483647 }
  0xb6   :  { %138 = vmin.xlane.f32.xlu1 %v137_v20  ;;  %v150_v23 = vshra.s32 %v148_v22, 16  ;;  %v149_v32 = vand.u32 65535, %v148_v22  ;;  %v173_v42 = vpop.permute.xlu0 %172 }
  0xb7   :  { %vm183_vm7 = vcmp.gt.f32.partialorder %v487_v15, %v173_v42 }
  0xb8   :  { %v152_v24 = vcvt.s32.f32 %v150_v23  ;;  %v151_v35 = vcvt.s32.f32 %v149_v32 }
  0xba   :  { %153 = vmin.xlane.f32.xlu1 %v152_v24 }
  0xcb   :  { %192 = vbcast.lane.b32.xlu1 %v190_v26, 256 }
  0xcf   :  { %199 = vbcast.lane.b32.xlu1 %v197_v27, 256 }
 0x143   :  { %v139_v30 = vpop.xlane.xlu1 %138 }
 0x144   :  { %vm140_vm5 = vcmp.eq.f32.partialorder %v137_v20, %v139_v30  ;;  %v145_v43 = vcvt.f32.s32 %v139_v30 }
 0x145   :  { %v141_v33 = vsel %vm140_vm5, %v136_v31, inf }
 0x146   :  { %142 = vmin.xlane.f32.xlu0 %v141_v33  ;;  %v146_v46 = vshll.u32 %v145_v43, 16 }
 0x147   :  { %v154_v34 = vpop.xlane.xlu1 %153 }
 0x148   :  { %vm155_vm6 = vcmp.eq.f32.partialorder %v152_v24, %v154_v34  ;;  %v160_v47 = vcvt.f32.s32 %v154_v34 }
 0x149   :  { %v156_v36 = vsel %vm155_vm6, %v151_v35, inf }
 0x14a   :  { %157 = vmin.xlane.f32.xlu1 %v156_v36  ;;  %v161_v51 = vshll.u32 %v160_v47, 16 }
 0x14b   :  { %v193_v41 = vpop.permute.xlu1 %192 }
 0x14f   :  { %v200_v44 = vpop.permute.xlu1 %199 }
 0x15b   :  { %235 = vbcast.lane.b32.xlu1 %v233_v38, 256 }
 0x15c   :  { %228 = vbcast.lane.b32.xlu0 %v226_v39, 256 }
 0x1d3   :  { %v143_v45 = vpop.xlane.xlu0 %142 }
 0x1d4   :  { %v144_v48 = vcvt.f32.s32 %v143_v45 }
 0x1d6   :  { %v147_v49 = vadd.s32 %v146_v46, %v144_v48 }
 0x1d7   :  { %v158_v50 = vpop.xlane.xlu1 %157  ;;  %v229_v58 = vpop.permute.xlu0 %228 }
 0x1d8   :  { %v159_v52 = vcvt.f32.s32 %v158_v50  ;;  %v201_v53 = vsel %vm183_vm7, %v147_v49, %v193_v41  ;;  %v239_v59 = vsel %vm183_vm7, %v487_v15, %v229_v58 }
 0x1d9   :  { %204 = vperm.xlu0 %360, %v201_v53  }
 0x1da   :  { %v162_v54 = vadd.s32 %v161_v51, %v159_v52 }
 0x1db   :  { %v236_v55 = vpop.permute.xlu1 %235 }
 0x1dc   :  { %v202_v56 = vsel %vm184_vm8, %v162_v54, %v200_v44  ;;  %v240_v57 = vsel %vm184_vm8, %v128_v18, %v236_v55 }
 0x1dd   :  { %207 = vperm.xlu1 %361, %v202_v56   ;;  %247 = vperm.xlu0 %360, %v240_v57  }
 0x1e1   :  { %244 = vperm.xlu1 %361, %v239_v59  }
 0x258   :  { %v205_v60 = vpop.permute.xlu0 %204 }
 0x259   :  { %v212_v63 = vrot.slane %v205_v60, %v211_v61 }
 0x25c   :  { %v208_v62 = vpop.permute.xlu1 %207  ;;  %v248_v1 = vpop.permute.xlu0 %247 }
 0x25d   :  { %v216_v0 = vrot.slane %v208_v62, %v211_v61  ;;  %v256_v4 = vrot.slane %v248_v1, %v211_v61 }
 0x25f   :  { %v218_v2 = vsel %vm217_vm9, %v216_v0, %v212_v63 }
 0x260   :  { %220 = vst.msk [vmem:[#allocation3] sm:$0x3] %vm109_vm1, %v218_v2  ;;  %v245_v3 = vpop.permute.xlu1 %244 }
 0x261   :  { %v252_v5 = vrot.slane %v245_v3, %v211_v61 }
 0x263   :  { %v257_v6 = vsel %vm217_vm9, %v256_v4, %v252_v5 }
 0x264   :  { %259 = vst.msk [vmem:[#allocation2] sm:$0x3] %vm109_vm1, %v257_v6 }
 0x265 PF:  { %263 = sbr.rel (!%p347_p0) target bundleno = 892 (0x37c), region = 33  ;;  %v264_v7 = vld [vmem:[%s525_s5] sm:$0x3] (%p347_p0)  ;;  %v400_v8 = vmov (%p347_p0), 0   ;;  %v265_v9 = vlaneseq (%p347_p0)  ;;  %v401_v17 = vmov (%p347_p0), 0.0  }
 0x266   :  { %362 = vset.pattern.permute.xlu0 (%p347_p0), %v400_v8  ;;  %v276_v11 = vld [vmem:[%s469_s22] sm:$0x3] (%p347_p0)  ;;  %v290_v20 = vld [vmem:[#allocation5] sm:$0x3] (%p347_p0)  ;;  %v280_v21 = vld [vmem:[#allocation4] sm:$0x3] (%p347_p0) }
 0x267   :  { %270 = vperm.xlu0 (%p347_p0), %362, %v264_v7   ;;  %v275_v10 = vld [vmem:[#allocation3] sm:$0x3] (%p347_p0)  ;;  %v266_v12 = vand.u32 (%p347_p0), 127, %v265_v9  ;;  %v288_v13 = vld [vmem:[%s474_s25] sm:$0x3] (%p347_p0) }
 0x268   :  { %vm277_vm10 = vcmp.eq.s32.totalorder (%p347_p0), %v275_v10, %v276_v11 }
 0x2e6   :  { %v271_v14 = vpop.permute.xlu0 %270 }
 0x2e7   :  { %vm272_vm11 = vcmp.lt.s32.totalorder %v266_v12, %v271_v14 }
 0x2e8   :  { %vm278_vm12 = vmand %vm272_vm11, %vm277_vm10  ;;  %v289_v15 = vsel %vm272_vm11, %v288_v13, 0.0 }
 0x2e9   :  { %v291_v16 = vsel %vm109_vm1, %v289_v15, 0.0  ;;  %v279_v18 = vsel %vm278_vm12, 1.0, %v401_v17 }
 0x2ea   :  { %292 = vadd.xlane.f32.xlu1 %v291_v16  ;;  %v282_v19 = vsel %vm109_vm1, %v279_v18, 0.0 }
 0x2eb   :  { %283 = vadd.xlane.f32.xlu0 %v282_v19 }
 0x377   :  { %v293_v22 = vpop.xlane.xlu1 %292 }
 0x378   :  { %v294_v23 = vadd.f32 %v293_v22, %v290_v20  ;;  %v284_v24 = vpop.xlane.xlu0 %283 }
 0x379   :  { %v285_v25 = vadd.f32 %v284_v24, %v280_v21 }
 0x37a   :  { %295 = vst.msk [vmem:[#allocation5] sm:$0x3] %vm106_vm0, %v294_v23 }
 0x37b   :  { %287 = vst.msk [vmem:[#allocation4] sm:$0x3] %vm106_vm0, %v285_v25 }
 0x37c PF:  { %v298_v26 = vld [vmem:[%s525_s5] sm:$0x3] }
 0x37d   :  { %v299_v27 = vcvt.s32.f32 %v298_v26 }
 0x37f   :  { %v301_v28 = vmax.f32 %v299_v27, 1.0  ;;  %v304_v29 = vmul.f32 -0.010050336, %v299_v27 }
 0x381   :  { %363 = vrcp.f32 %v301_v28  ;;  %v305_v30 = vmul.f32 1.442695, %v304_v29  ;;  %v311_v37 = vld [vmem:[#allocation5] sm:$0x3] }
 0x382   :  { %v300_v32 = vld [vmem:[#allocation4] sm:$0x3] }
 0x383   :  { %365 = vpow2.f32 %v305_v30 }
 0x38b   :  { %v364_v31 = vpop.eup %363 }
 0x38c   :  { %v303_v34 = vmul.f32 %v364_v31, %v300_v32 }
 0x38d   :  { %v366_v33 = vpop.eup %365 }
 0x38e   :  { %v307_v35 = vsub.f32 1.0, %v366_v33 }
 0x390   :  { %v309_v36 = vmul.f32 100.0, %v307_v35 }
 0x392   :  { %v310_v38 = vmul.f32 %v309_v36, %v303_v34 }
 0x394   :  { %v312_v39 = vmul.f32 %v311_v37, %v310_v38 }
 0x396   :  { %v313_v40 = vsub.f32 0.0, %v312_v39 }
 0x398   :  { %315 = vst.msk [vmem:[%s526_s6] sm:$0x3] %vm106_vm0, %v313_v40 }
 0x399   :  { %320 = vsyncpa [#allocation10], 1 }

</bundles_post_ra>
